<compile_context>
chip_gen: v7x
topology: tpu7x:2x2x1
jax: 0.10.0
libtpu: 0.0.40
codegen_flags: <defaults>
</compile_context>

<pallas_src>
import functools

import jax
import jax.numpy as jnp
from jax import lax
from jax.experimental import pallas as pl
from jax.experimental.pallas import tpu as pltpu

_NEG_LARGE = -1e30  # finite "-inf" stand-in (keeps exp()/max() arithmetic NaN-free)


def _round_up(a, b):
    return ((a + b - 1) // b) * b


def _gated_attention_kernel(x_ref, wvu_ref, bvu_ref, wa_ref,            # inputs
                            acc_ref, s_ref, m_ref, l_ref,               # outputs
                            *, dp, k, tile_n, n_valid, tiles_per_core,
                            needs_mask, mxu_dtype):
    c = pl.program_id(0)          # core-split index ("parallel")
    j = pl.program_id(1)          # tile index within the split ("arbitrary" reduction)

    @pl.when(j == 0)
    def _init():
        m_ref[...] = jnp.full(m_ref.shape, _NEG_LARGE, m_ref.dtype)
        l_ref[...] = jnp.zeros(l_ref.shape, l_ref.dtype)
        acc_ref[...] = jnp.zeros(acc_ref.shape, acc_ref.dtype)

    tile_idx = c * tiles_per_core + j      # global (unclamped) tile position

    x = x_ref[...]                                                     # (tn, L)
    if needs_mask:
        # Zero out-of-range rows (partial last tile / redundant padding tiles) so stale
        # VMEM can never reach the matmuls; rows on full tiles are untouched.
        row = tile_idx * tile_n + lax.broadcasted_iota(jnp.int32, (tile_n, 1), 0)
        x = jnp.where(row < n_valid, x, jnp.zeros_like(x))
    x_mx = x.astype(mxu_dtype)

    # Fused gating projection: one MXU matmul of width 2*Dp (bf16 in, f32 accumulate).
    h = jnp.dot(x_mx, wvu_ref[...], preferred_element_type=jnp.float32) + bvu_ref[...]
    av = jnp.tanh(h[:, :dp])                                           # attention_V (f32)
    au = jax.nn.sigmoid(h[:, dp:])                                     # attention_U (f32)
    gated = (av * au).astype(mxu_dtype)                                # (tn, Dp)

    # Attention logits, lane-dense: (K, Dp) x (tn, Dp)^T -> (K, tn) on the MXU.
    # (attention bias ba is constant over instances -> cancels in softmax; folded out.)
    s = jnp.einsum('kd,nd->kn', wa_ref[...], gated,
                   preferred_element_type=jnp.float32)                 # (K, tn) f32
    if needs_mask:
        col = tile_idx * tile_n + lax.broadcasted_iota(jnp.int32, (k, tile_n), 1)
        s = jnp.where(col < n_valid, s, _NEG_LARGE)

    s_ref[...] = s                 # streamed raw logits (normalized in the wrapper)

    # Online-softmax update + weighted-sum pooling (single pass over x).
    m_prev = m_ref[...]                                                # (K, 1)
    m_new = jnp.maximum(m_prev, jnp.max(s, axis=1, keepdims=True))
    alpha = jnp.exp(m_prev - m_new)                                    # (K, 1)
    p = jnp.exp(s - m_new)                                             # (K, tn) f32
    l_ref[...] = alpha * l_ref[...] + jnp.sum(p, axis=1, keepdims=True)
    acc_ref[...] = alpha * acc_ref[...] + jnp.dot(
        p.astype(mxu_dtype), x_mx, preferred_element_type=jnp.float32)  # (K, L)
    m_ref[...] = m_new


def gated_attention_output_head(x, params, *, tile_n=None, num_core_splits=2,
                                mxu_dtype=jnp.bfloat16):
    """x: (N, L) bag of instances (f32 or bf16; bf16 halves HBM traffic).
    Returns (Y_prob (K,1), Y_hat (K,1), A (K,N))."""
    N, L = x.shape
    wv, bv, wu, bu, wa, ba, wc, bc = params
    D = wv.shape[0]
    K = wa.shape[0]
    if K != 1:
        # TODO(synk): K > 1 would need M reshaped to (1, K*L) for the classifier (the
        # original module only type-checks for K == 1) and per-k pooling state.
        raise NotImplementedError("GatedAttention_OutputHead kernel requires K == 1")

    f32 = jnp.float32
    itemsize = jnp.dtype(x.dtype).itemsize

    # ---- tiling of the instance axis --------------------------------------------------
    if N >= 128:
        if tile_n is None:
            # ~2 MiB x tiles (4 MiB double-buffered) amortize the ~0.35us per-step cost
            # while staying far below the v7x 32 MiB scoped-VMEM default.
            tn = max(128, min(4096, (2 << 20) // max(1, L * itemsize)))
        else:
            tn = max(128, int(tile_n))
        tn = (tn // 128) * 128
        tn = min(tn, (N // 128) * 128)     # keep block <= array; last tile may be partial
        x_in, n_rows = x, N                # no jnp.pad copy of x
    else:
        # Tiny bags: a single 8-aligned tile (trivial pad, avoids exotic block shapes).
        tn = _round_up(max(N, 1), 8)
        x_in = x if tn == N else jnp.pad(x, ((0, tn - N), (0, 0)))
        n_rows = tn

    n_tiles = pl.cdiv(n_rows, tn)
    num_splits = max(1, min(int(num_core_splits), n_tiles))   # 2 feeds both v7x TCs
    tpc = pl.cdiv(n_tiles, num_splits)                        # tiles per split
    s_cols = num_splits * tpc * tn                            # raw-logit columns emitted
    needs_mask = (s_cols != N)                                 # partial / redundant tiles

    # ---- weight layout plumbing (outside the kernel) ----------------------------------
    dp = _round_up(D, 128)   # lane-aligned V/U split so h[:, :dp] / h[:, dp:] are free
    wvu = jnp.zeros((L, 2 * dp), mxu_dtype)
    wvu = wvu.at[:, :D].set(wv.T.astype(mxu_dtype))
    wvu = wvu.at[:, dp:dp + D].set(wu.T.astype(mxu_dtype))
    bvu = jnp.zeros((1, 2 * dp), f32)
    bvu = bvu.at[0, :D].set(bv.astype(f32))
    bvu = bvu.at[0, dp:dp + D].set(bu.astype(f32))
    wa_p = jnp.zeros((K, dp), mxu_dtype).at[:, :D].set(wa.astype(mxu_dtype))
    # ba is folded out (softmax shift invariance); bc is applied in the wrapper epilogue.

    kernel = functools.partial(_gated_attention_kernel, dp=dp, k=K, tile_n=tn,
                               n_valid=N, tiles_per_core=tpc, needs_mask=needs_mask,
                               mxu_dtype=mxu_dtype)

    last_data_tile = n_tiles - 1

    def x_index(c, j):
        # Clamp so redundant padding steps (when num_splits does not divide n_tiles)
        # re-read the last real tile; their rows are fully masked in-kernel.
        return (jnp.minimum(c * tpc + j, last_data_tile), 0)

    # VMEM budget estimate (double-buffered x + streamed score tiles + resident weights).
    vmem_bytes = (2 * tn * L * itemsize + 2 * 8 * tn * 4
                  + 2 * L * (2 * dp) * 2 + 2 * 8 * (2 * dp) * 4 + 2 * 8 * dp * 2
                  + 2 * num_splits * 8 * L * 4 + (64 << 10))
    vmem_limit = int(min(max(2 * vmem_bytes, 32 << 20), 100 << 20))

    acc_c, raw, m_c, l_c = pl.pallas_call(
        kernel,
        out_shape=(
            jax.ShapeDtypeStruct((num_splits, K, L), f32),   # per-split unnormalized M
            jax.ShapeDtypeStruct((K, s_cols), f32),          # lane-dense raw logits
            jax.ShapeDtypeStruct((num_splits, K, 1), f32),   # per-split running max
            jax.ShapeDtypeStruct((num_splits, K, 1), f32),   # per-split running sum
        ),
        grid_spec=pltpu.PrefetchScalarGridSpec(
            num_scalar_prefetch=0,
            grid=(num_splits, tpc),
            in_specs=[
                pl.BlockSpec((tn, L), x_index),                      # x: streamed tiles
                pl.BlockSpec((L, 2 * dp), lambda c, j: (0, 0)),      # fused [Wv;Wu]^T
                pl.BlockSpec((1, 2 * dp), lambda c, j: (0, 0)),      # fused bias
                pl.BlockSpec((K, dp), lambda c, j: (0, 0)),          # attention row Wa
            ],
            out_specs=(
                pl.BlockSpec((None, K, L), lambda c, j: (c, 0, 0)),  # resident acc (per c)
                pl.BlockSpec((K, tn), lambda c, j: (0, c * tpc + j)),  # streamed logits
                pl.BlockSpec((None, K, 1), lambda c, j: (c, 0, 0)),  # resident m
                pl.BlockSpec((None, K, 1), lambda c, j: (c, 0, 0)),  # resident l
            ),
        ),
        compiler_params=pltpu.CompilerParams(
            dimension_semantics=("parallel", "arbitrary"),
            vmem_limit_bytes=vmem_limit,
        ),
    )(x_in, wvu, bvu, wa_p)

    # ---- wrapper epilogue: merge flash states, normalize, classify (exact f32) --------
    m_glob = jnp.max(m_c, axis=0)                          # (K, 1)
    w = jnp.exp(m_c - m_glob)                              # (num_splits, K, 1)
    l_glob = jnp.sum(w * l_c, axis=0)                      # (K, 1)
    m_pool = jnp.sum(w * acc_c, axis=0) / l_glob           # (K, L)  == softmax(A) @ x
    a = jnp.exp(raw[:, :N] - m_glob) / l_glob              # (K, N)  softmax attention

    y_prob = jax.nn.sigmoid(m_pool @ wc.T.astype(f32) + bc.astype(f32))   # (K, 1)
    y_hat = (y_prob >= 0.5).astype(jnp.float32)            # torch.ge(., 0.5).float()
    return y_prob, y_hat, a


def _reference(x, params):
    """Pure-JAX f32 reference mirroring the PyTorch forward."""
    wv, bv, wu, bu, wa, ba, wc, bc = params
    x = x.astype(jnp.float32)
    av = jnp.tanh(x @ wv.T + bv)
    au = jax.nn.sigmoid(x @ wu.T + bu)
    logits = (av * au) @ wa.T + ba                 # (N, K)
    a = jax.nn.softmax(logits.T, axis=1)           # (K, N)
    m = a @ x                                      # (K, L)
    y_prob = jax.nn.sigmoid(m @ wc.T + bc)         # (K, 1)
    y_hat = (y_prob >= 0.5).astype(jnp.float32)
    return y_prob, y_hat, a


if __name__ == "__main__":
    def make_params(key, L, D, K):
        ks = jax.random.split(key, 8)
        wv = jax.random.normal(ks[0], (D, L), jnp.float32) * 0.1
        bv = jax.random.normal(ks[1], (D,), jnp.float32) * 0.1
        wu = jax.random.normal(ks[2], (D, L), jnp.float32) * 0.1
        bu = jax.random.normal(ks[3], (D,), jnp.float32) * 0.1
        wa = jax.random.normal(ks[4], (K, D), jnp.float32) * 0.1
        ba = jax.random.normal(ks[5], (K,), jnp.float32) * 0.1
        wc = jax.random.normal(ks[6], (1, L * K), jnp.float32) * 0.1
        bc = jax.random.normal(ks[7], (1,), jnp.float32) * 0.1
        return (wv, bv, wu, bu, wa, ba, wc, bc)

    key = jax.random.PRNGKey(0)
    # Cases: (N, L, D, K, tile_n, x dtype, core splits)
    #  1) multi-tile + 2-way split + redundant padded tile + partial last tile + D<128 pad
    #  2) even 2-way split, no masking, bf16 streamed x
    #  3) tiny bag, single tile, default tile picking
    cases = [
        (300, 128, 32, 1, 128, jnp.float32, 2),
        (256, 128, 64, 1, 128, jnp.bfloat16, 2),
        (40, 128, 32, 1, None, jnp.float32, 2),
    ]
    for (N, L, D, K, tn, x_dtype, splits) in cases:
        kx, kp, key = jax.random.split(key, 3)
        x = jax.random.normal(kx, (N, L), dtype=jnp.float32)
        params = make_params(kp, L, D, K)

        y_prob, y_hat, a = gated_attention_output_head(
            x.astype(x_dtype), params, tile_n=tn, num_core_splits=splits)
        jax.block_until_ready((y_prob, y_hat, a))

        y_prob_r, y_hat_r, a_r = _reference(x, params)
        assert y_prob.shape == (K, 1) and y_hat.shape == (K, 1) and a.shape == (K, N)
        assert bool(jnp.allclose(jnp.sum(a, axis=1), 1.0, atol=1e-3)), jnp.sum(a, axis=1)
        # bf16 MXU operands (and optionally bf16 x) -> loosened tolerances vs f32 reference.
        assert bool(jnp.allclose(a, a_r, atol=2e-2, rtol=2e-2)), (a, a_r)
        assert bool(jnp.allclose(y_prob, y_prob_r, atol=2e-2, rtol=2e-2)), (y_prob, y_prob_r)
        # Only check the hard threshold when the reference prob is not borderline.
        if float(jnp.min(jnp.abs(y_prob_r - 0.5))) > 2e-2:
            assert bool(jnp.allclose(y_hat, y_hat_r)), (y_hat, y_hat_r)

    print("KERNEL_OK")
</pallas_src>

<mosaic_0001>
module attributes {stable_mosaic.version = 11 : i64} {
  func.func @_gated_attention_kernel(%arg0: i32, %arg1: i32, %arg2: memref<128x128xf32, #tpu.memory_space<vmem>>, %arg3: memref<128x256xbf16, #tpu.memory_space<vmem>>, %arg4: memref<1x256xf32, #tpu.memory_space<vmem>>, %arg5: memref<1x128xbf16, #tpu.memory_space<vmem>>, %arg6: memref<1x1x128xf32, #tpu.memory_space<vmem>>, %arg7: memref<1x128xf32, #tpu.memory_space<vmem>>, %arg8: memref<1x1x1xf32, #tpu.memory_space<vmem>>, %arg9: memref<1x1x1xf32, #tpu.memory_space<vmem>>) attributes {dimension_semantics = [#tpu.dimension_semantics<parallel>, #tpu.dimension_semantics<arbitrary>], iteration_bounds = array<i64: 2, 2>, scalar_prefetch = 0 : i64, scratch_operands = 0 : i64, tpu.core_type = #tpu.core_type<tc>, window_params = [{transform_indices = @transform_0, window_bounds = array<i64: 128, 128>}, {pipeline_mode = #tpu.pipeline_mode<synchronous>, transform_indices = @transform_1, window_bounds = array<i64: 128, 256>}, {pipeline_mode = #tpu.pipeline_mode<synchronous>, transform_indices = @transform_2, window_bounds = array<i64: 1, 256>}, {pipeline_mode = #tpu.pipeline_mode<synchronous>, transform_indices = @transform_3, window_bounds = array<i64: 1, 128>}, {transform_indices = @transform_4, window_bounds = array<i64: 1, 1, 128>}, {transform_indices = @transform_5, window_bounds = array<i64: 1, 128>}, {transform_indices = @transform_6, window_bounds = array<i64: 1, 1, 1>}, {transform_indices = @transform_7, window_bounds = array<i64: 1, 1, 1>}]} {
    %c0_i32 = arith.constant 0 : i32
    %0 = arith.cmpi eq, %arg1, %c0_i32 : i32
    %1 = arith.extui %0 : i1 to i32
    %c0_i32_0 = arith.constant 0 : i32
    %2 = arith.cmpi ne, %1, %c0_i32_0 : i32
    scf.if %2 {
      %cst_37 = arith.constant -1.000000e+30 : f32
      %75 = vector.broadcast %cst_37 : f32 to vector<1x1xf32>
      %c0_38 = arith.constant 0 : index
      %c0_39 = arith.constant 0 : index
      %c0_40 = arith.constant 0 : index
      %76 = vector.load %arg8[%c0_38, %c0_39, %c0_40] : memref<1x1x1xf32, #tpu.memory_space<vmem>>, vector<1x1x1xf32>
      %77 = vector.shape_cast %76 : vector<1x1x1xf32> to vector<1x1xf32>
      %78 = vector.shape_cast %75 : vector<1x1xf32> to vector<1x1x1xf32>
      tpu.vector_store %arg8[%c0_38, %c0_39, %c0_40], %78 {strides = array<i32>} : memref<1x1x1xf32, #tpu.memory_space<vmem>>, vector<1x1x1xf32>,
      %cst_41 = arith.constant 0.000000e+00 : f32
      %79 = vector.broadcast %cst_41 : f32 to vector<1x1xf32>
      %c0_42 = arith.constant 0 : index
      %c0_43 = arith.constant 0 : index
      %c0_44 = arith.constant 0 : index
      %80 = vector.load %arg9[%c0_42, %c0_43, %c0_44] : memref<1x1x1xf32, #tpu.memory_space<vmem>>, vector<1x1x1xf32>
      %81 = vector.shape_cast %80 : vector<1x1x1xf32> to vector<1x1xf32>
      %82 = vector.shape_cast %79 : vector<1x1xf32> to vector<1x1x1xf32>
      tpu.vector_store %arg9[%c0_42, %c0_43, %c0_44], %82 {strides = array<i32>} : memref<1x1x1xf32, #tpu.memory_space<vmem>>, vector<1x1x1xf32>,
      %cst_45 = arith.constant 0.000000e+00 : f32
      %83 = vector.broadcast %cst_45 : f32 to vector<1x128xf32>
      %c0_46 = arith.constant 0 : index
      %c0_47 = arith.constant 0 : index
      %c0_48 = arith.constant 0 : index
      %84 = vector.load %arg6[%c0_46, %c0_47, %c0_48] : memref<1x1x128xf32, #tpu.memory_space<vmem>>, vector<1x1x128xf32>
      %85 = vector.shape_cast %84 : vector<1x1x128xf32> to vector<1x128xf32>
      %86 = vector.shape_cast %83 : vector<1x128xf32> to vector<1x1x128xf32>
      tpu.vector_store %arg6[%c0_46, %c0_47, %c0_48], %86 {strides = array<i32>} : memref<1x1x128xf32, #tpu.memory_space<vmem>>, vector<1x1x128xf32>,
    } else {
    }
    %c2_i32 = arith.constant 2 : i32
    %3 = arith.muli %arg0, %c2_i32 : i32
    %4 = arith.addi %3, %arg1 : i32
    %c0 = arith.constant 0 : index
    %c0_1 = arith.constant 0 : index
    %5 = vector.load %arg2[%c0, %c0_1] : memref<128x128xf32, #tpu.memory_space<vmem>>, vector<128x128xf32>
    %c128_i32 = arith.constant 128 : i32
    %6 = arith.muli %4, %c128_i32 : i32
    %7 = tpu.iota {dimensions = array<i32: 0>} : vector<128x1xi32>
    %8 = vector.broadcast %6 : i32 to vector<128x1xi32>
    %9 = arith.addi %8, %7 : vector<128x1xi32>
    %c300_i32 = arith.constant 300 : i32
    %10 = vector.broadcast %c300_i32 : i32 to vector<128x1xi32>
    %11 = arith.cmpi slt, %9, %10 : vector<128x1xi32>
    %cst = arith.constant 0.000000e+00 : f32
    %12 = vector.broadcast %cst : f32 to vector<128x128xf32>
    %13 = vector.shape_cast %11 : vector<128x1xi1> to vector<128x1xi1>
    %14 = vector.broadcast %13 : vector<128x1xi1> to vector<128x128xi1>
    %15 = arith.select %14, %5, %12 : vector<128x128xi1>, vector<128x128xf32>
    %16 = arith.truncf %15 : vector<128x128xf32> to vector<128x128xbf16>
    %c0_2 = arith.constant 0 : index
    %c0_3 = arith.constant 0 : index
    %17 = vector.load %arg3[%c0_2, %c0_3] : memref<128x256xbf16, #tpu.memory_space<vmem>>, vector<128x256xbf16>
    %cst_4 = arith.constant dense<0.000000e+00> : vector<128x256xf32>
    %18 = tpu.matmul %16, %17, %cst_4 {dimension_numbers = #tpu.dot_dimension_numbers<[1], [0], [0], [1], [0, 0, 1, 1], [], []>} : vector<128x128xbf16>, vector<128x256xbf16>, vector<128x256xf32> -> vector<128x256xf32>
    %c0_5 = arith.constant 0 : index
    %c0_6 = arith.constant 0 : index
    %19 = vector.load %arg4[%c0_5, %c0_6] : memref<1x256xf32, #tpu.memory_space<vmem>>, vector<1x256xf32>
    %20 = vector.broadcast %19 : vector<1x256xf32> to vector<128x256xf32>
    %21 = arith.addf %18, %20 : vector<128x256xf32>
    %22 = vector.extract_strided_slice %21 {offsets = [0, 0], sizes = [128, 128], strides = [1, 1]} : vector<128x256xf32> to vector<128x128xf32>
    %23 = math.tanh %22 : vector<128x128xf32>
    %24 = vector.extract_strided_slice %21 {offsets = [0, 128], sizes = [128, 128], strides = [1, 1]} : vector<128x256xf32> to vector<128x128xf32>
    %25 = arith.negf %24 : vector<128x128xf32>
    %26 = math.exp %25 : vector<128x128xf32>
    %cst_7 = arith.constant 1.000000e+00 : f32
    %27 = vector.broadcast %cst_7 : f32 to vector<128x128xf32>
    %28 = arith.addf %27, %26 : vector<128x128xf32>
    %29 = arith.divf %27, %28 : vector<128x128xf32>
    %30 = arith.mulf %23, %29 : vector<128x128xf32>
    %31 = arith.truncf %30 : vector<128x128xf32> to vector<128x128xbf16>
    %c0_8 = arith.constant 0 : index
    %c0_9 = arith.constant 0 : index
    %32 = vector.load %arg5[%c0_8, %c0_9] : memref<1x128xbf16, #tpu.memory_space<vmem>>, vector<1x128xbf16>
    "tpu.trace_start"() <{level = 10 : i32, message = "kd,nd->kn"}> : () -> ()
    %cst_10 = arith.constant dense<0.000000e+00> : vector<1x128xf32>
    %33 = tpu.matmul %32, %31, %cst_10 {dimension_numbers = #tpu.dot_dimension_numbers<[1], [1], [0], [0], [0, 0, 1, 0], [], []>} : vector<1x128xbf16>, vector<128x128xbf16>, vector<1x128xf32> -> vector<1x128xf32>
    "tpu.trace_stop"() : () -> ()
    %c128_i32_11 = arith.constant 128 : i32
    %34 = arith.muli %4, %c128_i32_11 : i32
    %35 = tpu.iota {dimensions = array<i32: 1>} : vector<1x128xi32>
    %36 = vector.broadcast %34 : i32 to vector<1x128xi32>
    %37 = arith.addi %36, %35 : vector<1x128xi32>
    %c300_i32_12 = arith.constant 300 : i32
    %38 = vector.broadcast %c300_i32_12 : i32 to vector<1x128xi32>
    %39 = arith.cmpi slt, %37, %38 : vector<1x128xi32>
    %cst_13 = arith.constant -1.000000e+30 : f32
    %40 = vector.broadcast %cst_13 : f32 to vector<1x128xf32>
    %41 = arith.select %39, %33, %40 : vector<1x128xi1>, vector<1x128xf32>
    %c0_14 = arith.constant 0 : index
    %c0_15 = arith.constant 0 : index
    %42 = vector.load %arg7[%c0_14, %c0_15] : memref<1x128xf32, #tpu.memory_space<vmem>>, vector<1x128xf32>
    tpu.vector_store %arg7[%c0_14, %c0_15], %41 {strides = array<i32>} : memref<1x128xf32, #tpu.memory_space<vmem>>, vector<1x128xf32>,
    %c0_16 = arith.constant 0 : index
    %c0_17 = arith.constant 0 : index
    %c0_18 = arith.constant 0 : index
    %43 = vector.load %arg8[%c0_16, %c0_17, %c0_18] : memref<1x1x1xf32, #tpu.memory_space<vmem>>, vector<1x1x1xf32>
    %44 = vector.shape_cast %43 : vector<1x1x1xf32> to vector<1x1xf32>
    %cst_19 = arith.constant dense<0xFF800000> : vector<1xf32>
    %45 = vector.multi_reduction <maximumf>, %41, %cst_19 [1] : vector<1x128xf32> to vector<1xf32>
    %46 = vector.shape_cast %45 : vector<1xf32> to vector<1x1xf32>
    %47 = arith.maximumf %44, %46 : vector<1x1xf32>
    %48 = arith.subf %44, %47 : vector<1x1xf32>
    %49 = math.exp %48 : vector<1x1xf32>
    %50 = vector.broadcast %47 : vector<1x1xf32> to vector<1x128xf32>
    %51 = arith.subf %41, %50 : vector<1x128xf32>
    %52 = math.exp %51 : vector<1x128xf32>
    %c0_20 = arith.constant 0 : index
    %c0_21 = arith.constant 0 : index
    %c0_22 = arith.constant 0 : index
    %53 = vector.load %arg9[%c0_20, %c0_21, %c0_22] : memref<1x1x1xf32, #tpu.memory_space<vmem>>, vector<1x1x1xf32>
    %54 = vector.shape_cast %53 : vector<1x1x1xf32> to vector<1x1xf32>
    %55 = arith.mulf %49, %54 : vector<1x1xf32>
    %cst_23 = arith.constant dense<0.000000e+00> : vector<1xf32>
    %56 = vector.multi_reduction <add>, %52, %cst_23 [1] : vector<1x128xf32> to vector<1xf32>
    %57 = vector.shape_cast %56 : vector<1xf32> to vector<1x1xf32>
    %58 = arith.addf %55, %57 : vector<1x1xf32>
    %c0_24 = arith.constant 0 : index
    %c0_25 = arith.constant 0 : index
    %c0_26 = arith.constant 0 : index
    %59 = vector.load %arg9[%c0_24, %c0_25, %c0_26] : memref<1x1x1xf32, #tpu.memory_space<vmem>>, vector<1x1x1xf32>
    %60 = vector.shape_cast %59 : vector<1x1x1xf32> to vector<1x1xf32>
    %61 = vector.shape_cast %58 : vector<1x1xf32> to vector<1x1x1xf32>
    tpu.vector_store %arg9[%c0_24, %c0_25, %c0_26], %61 {strides = array<i32>} : memref<1x1x1xf32, #tpu.memory_space<vmem>>, vector<1x1x1xf32>,
    %c0_27 = arith.constant 0 : index
    %c0_28 = arith.constant 0 : index
    %c0_29 = arith.constant 0 : index
    %62 = vector.load %arg6[%c0_27, %c0_28, %c0_29] : memref<1x1x128xf32, #tpu.memory_space<vmem>>, vector<1x1x128xf32>
    %63 = vector.shape_cast %62 : vector<1x1x128xf32> to vector<1x128xf32>
    %64 = vector.broadcast %49 : vector<1x1xf32> to vector<1x128xf32>
    %65 = arith.mulf %64, %63 : vector<1x128xf32>
    %66 = arith.truncf %52 : vector<1x128xf32> to vector<1x128xbf16>
    %cst_30 = arith.constant dense<0.000000e+00> : vector<1x128xf32>
    %67 = tpu.matmul %66, %16, %cst_30 {dimension_numbers = #tpu.dot_dimension_numbers<[1], [0], [0], [1], [0, 0, 1, 1], [], []>} : vector<1x128xbf16>, vector<128x128xbf16>, vector<1x128xf32> -> vector<1x128xf32>
    %68 = arith.addf %65, %67 : vector<1x128xf32>
    %c0_31 = arith.constant 0 : index
    %c0_32 = arith.constant 0 : index
    %c0_33 = arith.constant 0 : index
    %69 = vector.load %arg6[%c0_31, %c0_32, %c0_33] : memref<1x1x128xf32, #tpu.memory_space<vmem>>, vector<1x1x128xf32>
    %70 = vector.shape_cast %69 : vector<1x1x128xf32> to vector<1x128xf32>
    %71 = vector.shape_cast %68 : vector<1x128xf32> to vector<1x1x128xf32>
    tpu.vector_store %arg6[%c0_31, %c0_32, %c0_33], %71 {strides = array<i32>} : memref<1x1x128xf32, #tpu.memory_space<vmem>>, vector<1x1x128xf32>,
    %c0_34 = arith.constant 0 : index
    %c0_35 = arith.constant 0 : index
    %c0_36 = arith.constant 0 : index
    %72 = vector.load %arg8[%c0_34, %c0_35, %c0_36] : memref<1x1x1xf32, #tpu.memory_space<vmem>>, vector<1x1x1xf32>
    %73 = vector.shape_cast %72 : vector<1x1x1xf32> to vector<1x1xf32>
    %74 = vector.shape_cast %47 : vector<1x1xf32> to vector<1x1x1xf32>
    tpu.vector_store %arg8[%c0_34, %c0_35, %c0_36], %74 {strides = array<i32>} : memref<1x1x1xf32, #tpu.memory_space<vmem>>, vector<1x1x1xf32>,
    return
  }
  func.func @transform_0(%arg0: i32, %arg1: i32) -> (i32, i32) {
    %c2_i32 = arith.constant 2 : i32
    %0 = arith.muli %arg0, %c2_i32 : i32
    %1 = arith.addi %0, %arg1 : i32
    %c2_i32_0 = arith.constant 2 : i32
    %2 = arith.minsi %1, %c2_i32_0 : i32
    %c0_i32 = arith.constant 0 : i32
    %c0_i32_1 = arith.constant 0 : i32
    return %2, %c0_i32 : i32, i32
  }
  func.func @transform_1(%arg0: i32, %arg1: i32) -> (i32, i32) {
    %c0_i32 = arith.constant 0 : i32
    %c0_i32_0 = arith.constant 0 : i32
    %c0_i32_1 = arith.constant 0 : i32
    return %c0_i32, %c0_i32_0 : i32, i32
  }
  func.func @transform_2(%arg0: i32, %arg1: i32) -> (i32, i32) {
    %c0_i32 = arith.constant 0 : i32
    %c0_i32_0 = arith.constant 0 : i32
    %c0_i32_1 = arith.constant 0 : i32
    return %c0_i32, %c0_i32_0 : i32, i32
  }
  func.func @transform_3(%arg0: i32, %arg1: i32) -> (i32, i32) {
    %c0_i32 = arith.constant 0 : i32
    %c0_i32_0 = arith.constant 0 : i32
    %c0_i32_1 = arith.constant 0 : i32
    return %c0_i32, %c0_i32_0 : i32, i32
  }
  func.func @transform_4(%arg0: i32, %arg1: i32) -> (i32, i32, i32) {
    %c0_i32 = arith.constant 0 : i32
    %c0_i32_0 = arith.constant 0 : i32
    %c0_i32_1 = arith.constant 0 : i32
    return %arg0, %c0_i32, %c0_i32_0 : i32, i32, i32
  }
  func.func @transform_5(%arg0: i32, %arg1: i32) -> (i32, i32) {
    %c2_i32 = arith.constant 2 : i32
    %0 = arith.muli %arg0, %c2_i32 : i32
    %1 = arith.addi %0, %arg1 : i32
    %c0_i32 = arith.constant 0 : i32
    %c0_i32_0 = arith.constant 0 : i32
    return %c0_i32, %1 : i32, i32
  }
  func.func @transform_6(%arg0: i32, %arg1: i32) -> (i32, i32, i32) {
    %c0_i32 = arith.constant 0 : i32
    %c0_i32_0 = arith.constant 0 : i32
    %c0_i32_1 = arith.constant 0 : i32
    return %arg0, %c0_i32, %c0_i32_0 : i32, i32, i32
  }
  func.func @transform_7(%arg0: i32, %arg1: i32) -> (i32, i32, i32) {
    %c0_i32 = arith.constant 0 : i32
    %c0_i32_0 = arith.constant 0 : i32
    %c0_i32_1 = arith.constant 0 : i32
    return %arg0, %c0_i32, %c0_i32_0 : i32, i32, i32
  }
}

</mosaic_0001>

<bundles_post_ra>
// kernel: tpu_custom_call.1
= control target key start
LH: loop header
LB: loop body
LE: loop exit
PB: predicated region body
PF: predicated region fallthrough
CT: control target
= control target key end

     0   :  { %s2547_s0 = inlined_call_operand.hbm [shape: f32[300,128], index: 0, kind: input, shape index: {}]   ;;  %s2548_s1 = inlined_call_operand.hbm [shape: bf16[128,256], index: 1, kind: input, shape index: {}]   ;;  %s2549_s2 = inlined_call_operand.vmem [shape: f32[1,256], index: 2, kind: input, shape index: {}]   ;;  %s2550_s3 = inlined_call_operand.vmem [shape: bf16[1,128], index: 3, kind: input, shape index: {}]   ;;  %s2551_s4 = inlined_call_operand.hbm [shape: f32[2,1,128], index: 4, kind: output, shape index: {0}]   ;;  %s2552_s5 = inlined_call_operand.hbm [shape: f32[1,512], index: 5, kind: output, shape index: {1}]   ;;  %s2553_s6 = inlined_call_operand.vmem [shape: f32[2,1,1], index: 6, kind: output, shape index: {2}]   ;;  %s2554_s7 = inlined_call_operand.vmem [shape: f32[2,1,1], index: 7, kind: output, shape index: {3}]  }
   0x1   :  { %2574 = sst [smem:[#allocation26_spill]] %s2550_s3 }
   0x2   :  { %2575 = sst [smem:[#allocation27_spill]] %s2551_s4 }
   0x3   :  { %2576 = sst [smem:[#allocation28_spill]] %s2552_s5 }
   0x4   :  { %13 = vsyncpa [#allocation3], 0 }
   0x5   :  { %15 = vsyncpa [#allocation3 + $0x1], 0 }
   0x6   :  { %16 = vsyncpa [#allocation6], 0 }
   0x7   :  { %17 = vsyncpa [#allocation4], 0 }
   0x8   :  { %19 = vsyncpa [#allocation4 + $0x1], 0 }
   0x9   :  { %20 = vsyncpa [#allocation9], 0 }
   0xa   :  { %22 = vsyncpa [#allocation9 + $0x1], 0  ;;  %s1934_s24 = smov 0   ;;  %s1936_s25 = smov 0  }
   0xb   :  { %s1938_s26 = smov 0   ;;  %s1940_s27 = smov 0  }
   0xc   :  { %s1942_s28 = smov 0   ;;  %s1944_s29 = smov 0  }
   0xd   :  { %s1946_s30 = smov 0   ;;  %s1948_s8 = smov 0  }
   0xe   :  { %s1950_s9 = smov 0   ;;  %s1952_s10 = smov 0  }
   0xf   :  { %s1954_s11 = smov 0   ;;  %s1956_s12 = smov 0  }
  0x10   :  { %s1958_s13 = smov 0   ;;  %s1960_s14 = smov 0  }
  0x11 LB: > { %2577 = sst [smem:[#allocation14_spill]] %s1827_s24  ;;  %s2558_s15 = sadd.s32 4294967295, %s1879_s14   ;;  %s1879_s14 = sphi %s1960_s14, %s28_s14   ;;  %s1875_s13 = sphi %s1958_s13, %s2653_s13   ;;  %s1871_s12 = sphi %s1956_s12, %s2642_s12   ;;  %s1867_s11 = sphi %s1954_s11, %s2652_s11   ;;  %s1863_s10 = sphi %s1952_s10, %s2640_s10   ;;  %s1859_s9 = sphi %s1950_s9, %s2651_s9   ;;  %s1855_s8 = sphi %s1948_s8, %s2650_s8   ;;  %s1851_s30 = sphi %s1946_s30, %s2649_s30   ;;  %s1847_s29 = sphi %s1944_s29, %s2638_s29   ;;  %s1843_s28 = sphi %s1942_s28, %s2648_s28   ;;  %s1839_s27 = sphi %s1940_s27, %s2647_s27   ;;  %s1835_s26 = sphi %s1938_s26, %s2636_s26   ;;  %s1831_s25 = sphi %s1936_s25, %s2646_s25   ;;  %s1827_s24 = sphi %s1934_s24, %s2645_s24  }
  0x12   : > { %2578 = sst [smem:[#allocation15_spill]] %s1835_s26  ;;  %s37_s17 = sadd.s32 1, %s1871_s12 }
  0x13   : > { %2579 = sst [smem:[#allocation16_spill]] %s1847_s29  ;;  %s40_s18 = sadd.s32 1, %s1875_s13 }
  0x14   : > { %2580 = sst [smem:[#allocation17_spill]] %s1871_s12  ;;  %p38_p0 = scmp.ge.s32.totalorder %s37_s17, 2 }
  0x15   : > { %2581 = sst [smem:[#allocation18_spill]] %s1875_s13  ;;  %s1205_s19 = sshll.u32 %s1875_s13, 1 }
  0x16   : > { %s2010_s20 = sadd.s32 %s1871_s12, %s1205_s19  ;;  %s55_s21 = sadd.s32 1, %s1859_s9 }
  0x17   : > { %s2655_s17 = smov (%p38_p0, %s37_s17), 0  ;;  %s2657_s18 = smov (!%p38_p0, %s40_s18), %s1875_s13 }
  0x18   : > { %2582 = sst [smem:[#allocation19_spill]] %s2655_s17  ;;  %p46_p1 = scmp.lt.s32.totalorder %s2010_s20, 2 }
  0x19   : > { %p62_p2 = scmp.ne.s32.totalorder %s1859_s9, %s1855_s8  ;;  %p42_p3 = scmp.ge.s32.totalorder %s2657_s18, 2 }
  0x1a   : > { %p63_p4 = scmp.eq.s32.totalorder %s1879_s14, 0  ;;  %p68_p6 = scmp.ne.s32.totalorder %s1855_s8, %s1851_s30 }
  0x1b   : > { %s2021_s22 = scalar_select %p46_p1, %s2010_s20, 2 }
  0x1c   : > { %s2659_s18 = smov (%p42_p3, %s2657_s18), 0  ;;  %p2025_p5 = por %p63_p4, %p62_p2 }
  0x1d   : > { %2583 = sst [smem:[#allocation20_spill]] %s2659_s18  ;;  %s1206_s19 = sshll.u32 %s2659_s18, 1 }
  0x1e   : > { %s2584_s23 = scalar_select %p2025_p5, 1, 0 }
  0x1f   : > { %p2034_p7 = scmp.eq.s32.totalorder %s2558_s15, 0  ;;  %s49_s12 = sadd.s32 %s1206_s19, %s2655_s17 }
  0x20   : > { %s141_s4 = ssub.s32 %s1875_s13, %s2659_s18  ;;  %p50_p8 = scmp.lt.s32.totalorder %s49_s12, 2 }
  0x21   : > { %s2585_s16 = scalar_select %p2034_p7, 1, 0 }
  0x22   : > { %p2043_p9 = por %p2034_p7, %p68_p6  ;;  %p142_p10 = scmp.eq.s32.totalorder %s141_s4, 0 }
  0x23   : > { %s144_s30 = sadd.s32 1, %s1847_s29  ;;  %p154_p11 = scmp.ne.s32.totalorder %s1847_s29, %s1843_s28 }
  0x24   : > { %s2586_s5 = scalar_select %p2043_p9, 1, 0 }
  0x25   : > { %s51_s15 = scalar_select %p50_p8, %s49_s12, 2 }
  0x26   : > { %s2049_s3 = scalar_select %p142_p10, %s1847_s29, %s144_s30  }
  0x27   : > { %s52_s19 = ssub.s32 %s2021_s22, %s51_s15  ;;  %s2588_s18 = sadd.s32 4294967295, %s1879_s14  }
  0x28   : > { %2587 = sst [smem:[#allocation21_spill]] %s2049_s3  ;;  %p53_p12 = scmp.eq.s32.totalorder %s52_s19, 0 }
  0x29   : > { %p2056_p13 = scmp.eq.s32.totalorder %s2588_s18, 3  ;;  %p160_p0 = scmp.ne.s32.totalorder %s1843_s28, %s1839_s27 }
  0x2a   : > { %s2590_s4 = sadd.s32 4294967294, %s1879_s14   ;;  %s171_s18 = ssub.s32 %s2010_s20, %s49_s12 }
  0x2b   : > { %p161_p1 = scmp.eq.s32.totalorder %s2590_s4, 3  ;;  %p2069_p2 = por %p2056_p13, %p154_p11 }
  0x2c   : > { %s2065_s13 = scalar_select %p53_p12, %s1859_s9, %s55_s21  }
  0x2d   : > { %s2592_s30 = scalar_select %p2069_p2, 1, 0 }
  0x2e   : > { %2591 = sst [smem:[#allocation22_spill]] %s2065_s13  ;;  %p2073_p3 = por %p161_p1, %p160_p0 }
  0x2f   : > { %s174_s19 = sadd.s32 1, %s1835_s26  ;;  %p172_p4 = scmp.eq.s32.totalorder %s171_s18, 0 }
  0x30   : > { %s2593_s15 = scalar_select %p2073_p3, 1, 0 }
  0x31   : > { %p184_p6 = scmp.ne.s32.totalorder %s1835_s26, %s1831_s25  ;;  %p190_p8 = scmp.ne.s32.totalorder %s1831_s25, %s1827_s24 }
  0x32   : > { %2594 = sst [smem:[#allocation23_spill]] %s2593_s15  ;;  %p1209_p10 = scmp.ge.s32.totalorder %s1879_s14, 1 }
  0x33   : > { %s2085_s3 = scalar_select %p172_p4, %s1835_s26, %s174_s19  }
  0x34   : > { %p2089_p12 = por %p184_p6, %p2056_p13  ;;  %p2093_p11 = por %p190_p8, %p161_p1 }
  0x35   : > { %2595 = sst [smem:[#allocation24_spill]] %s2085_s3  ;;  %p250_p0 = scmp.lt.s32.totalorder %s1879_s14, 5 }
  0x36   : > { %s2596_s21 = scalar_select %p2089_p12, 1, 0 }
  0x37   : > { %s2597_s4 = scalar_select %p2093_p11, 1, 0 }
  0x38   : > { %p2098_p3 = pnand %p1209_p10, %p250_p0  ;;  %s1881_s12 = smov [#allocation5]  }
  0x39   : > { %2598 = sst [smem:[#allocation25_spill]] %s2597_s4  ;;  %s262_s20 = sshll.u32 %s1881_s12, 4  ;;  %s263_s20 = int_to_ptr.vmem [resolvable:$true] %s262_s20 }
  0x3a   : > { %s2599_s13 = scalar_select %p2098_p3, 1, 0 }
  0x3b   : > { %p1379_p4 = pneg %p2098_p3  ;;  %s1641_s29 = scalar_lea.hbm %s2548_s1, 2048 }
  0x3c   : > { %p1642_p1 = scmp.ne.s32.totalorder %s2548_s1, %s1641_s29  ;;  %p1648_p0 = scmp.lt.u32.totalorder %s1641_s29, %s2548_s1 }
  0x3d   : > { %p2106_p13 = pnand %p1379_p4, %p2034_p7 }
  0x3f   : > { %p1643_p6 = pneg %p2106_p13 }
  0x41   : > { %p1644_p8 = pnand %p1643_p6, %p1642_p1 }
  0x43   : > { %p1645_p10 = pneg %p1644_p8 }
  0x45   : > { %p1650_p4 = pnand %p1648_p0, %p1645_p10 }
  0x47   : > { %1653 = shalt.err (!%p1650_p4)
}
  0x48   : > { %s1654_s24 = scalar_lea.vmem %s263_s20, 2048  ;;  %p1662_p7 = scmp.lt.s32.totalorder %s263_s20, %s263_s20 }
  0x49   : > { %p1655_p11 = scmp.ne.s32.totalorder %s263_s20, %s1654_s24  ;;  %p1663_p9 = scmp.lt.s32.totalorder %s1654_s24, %s1654_s24 }
  0x4b   : > { %p1657_p2 = pnand %p1655_p11, %p1643_p6  ;;  %p1664_p3 = por %p1663_p9, %p1662_p7 }
  0x4d   : > { %p1658_p12 = pneg %p1657_p2 }
  0x4f   : > { %p1665_p5 = pnand %p1664_p3, %p1658_p12 }
  0x51   : > { %1668 = shalt.err (!%p1665_p5)
}
  0x52   : > { %s1882_s3 = smov 128   ;;  %s1883_s26 = smov 8  }
  0x53   : > { %1382 = dma.hbm_to_vmem [thread:$0]  (!%p2106_p13), %s2548_s1, 2048, %s263_s20, [#allocation6], %s1882_s3, %s1882_s3, %s1883_s26  }
  0x54   : > { %p1211_p1 = scmp.ge.s32.totalorder %s1879_s14, 4 }
  0x55   : > { %p2601_p8 = scmp.ne.s32.totalorder (!%p1211_p1), %s2584_s23, 0 }
  0x56   : > { %278 = sbr.rel (%p1211_p1) target bundleno = 128 (0x80), region = 28 }
  0x5d   : > { %281 = sbr.rel (!%p2601_p8) target bundleno = 128 (0x80), region = 32  ;;  %s282_s24 = sand.u32 (%p2601_p8), 1, %s1859_s9  }
  0x5e   : > { %s1214_s29 = sshll.u32 (%p2601_p8), %s2021_s22, 4  ;;  %s1212_s4 = sshll.u32 (%p2601_p8), %s282_s24, 7 }
  0x5f   : > { %s292_s12 = ssub.s32 (%p2601_p8), 38, %s1214_s29  ;;  %s2134_s18 = scalar_lea.sflag (%p2601_p8), [#allocation3], %s282_s24 }
  0x60   : > { %p293_p5 = scmp.lt.s32.totalorder (%p2601_p8), %s292_s12, 16  ;;  %s286_s20 = scalar_lea.vmem (%p2601_p8), [#allocation2], %s1212_s4 }
  0x64   : > { %s2661_s12 = smov (!%p293_p5, %s292_s12), 16 }
  0x65   : > { %s2131_s15 = sshll.u32 %s2661_s12, 7 }
  0x66   : > { %s297_s17 = ssub.s32 2048, %s2131_s15 }
  0x67   : > { %298 = vsyncadd %s2134_s18, %s297_s17  ;;  %p1216_p7 = scmp.ne.s32.totalorder %s2131_s15, 0  ;;  %s1311_s23 = sshll.u32 %s2021_s22, 11 }
  0x68   : > { %s2142_s19 = scalar_lea.hbm %s2547_s0, %s1311_s23  ;;  %s303_s24 = sshll.u32 %s286_s20, 4  ;;  %s2144_s24 = int_to_ptr.vmem [resolvable:$true] %s303_s24 }
  0x69   : > { %s1669_s29 = scalar_lea.hbm %s2142_s19, %s2131_s15  ;;  %s1673_s22 = scalar_lea.hbm %s2547_s0, 4864 }
  0x6a   : > { %p1670_p9 = scmp.ne.s32.totalorder %s2142_s19, %s1669_s29  ;;  %p1674_p12 = scmp.lt.u32.totalorder %s2142_s19, %s2547_s0 }
  0x6b   : > { %p1675_p11 = scmp.lt.u32.totalorder %s1673_s22, %s1669_s29  ;;  %p1677_p6 = scmp.lt.u32.totalorder %s1669_s29, %s2142_s19 }
  0x6c   : > { %p1671_p2 = pnand %p1670_p9, %p1216_p7 }
  0x6d   : > { %p1676_p13 = por %p1675_p11, %p1674_p12 }
  0x6e   : > { %p1672_p3 = pneg %p1671_p2 }
  0x6f   : > { %p1678_p10 = por %p1677_p6, %p1676_p13 }
  0x71   : > { %p1679_p0 = pnand %p1678_p10, %p1672_p3 }
  0x73   : > { %1682 = shalt.err (!%p1679_p0)
}
  0x74   : > { %s1683_s20 = scalar_lea.vmem %s2144_s24, %s2131_s15  ;;  %s1884_s23 = smov [#allocation2]  }
  0x75   : > { %p1684_p4 = scmp.ne.s32.totalorder %s2144_s24, %s1683_s20  ;;  %s1687_s26 = sshll.u32 %s1884_s23, 4  ;;  %s1688_s26 = int_to_ptr.vmem [resolvable:$false] %s1687_s26 }
  0x76   : > { %s1689_s4 = scalar_lea.vmem %s1688_s26, 4096  ;;  %p1690_p5 = scmp.lt.s32.totalorder %s2144_s24, %s1688_s26 }
  0x77   : > { %p1685_p1 = pnand %p1684_p4, %p1216_p7  ;;  %p1691_p9 = scmp.lt.s32.totalorder %s1689_s4, %s1683_s20 }
  0x79   : > { %p1686_p8 = pneg %p1685_p1  ;;  %p1692_p2 = por %p1691_p9, %p1690_p5 }
  0x7b   : > { %p1693_p12 = pnand %p1692_p2, %p1686_p8 }
  0x7d   : > { %1696 = shalt.err (!%p1693_p12)
}
  0x7e   : > { %s1885_s29 = smov 128   ;;  %s1886_s12 = smov 8  }
  0x7f   : > { %309 = dma.hbm_to_vmem [thread:$0]  (%p1216_p7), %s2142_s19, %s2131_s15, %s2144_s24, %s2134_s18, %s1885_s29, %s1885_s29, %s1886_s12  }
  0x80 PF: > { %p2602_p3 = scmp.ne.s32.totalorder %s2599_s13, 0 }
  0x81   : > { %s317_s22 = sand.u32 (!%p2602_p3), 1, %s1855_s8   ;;  %p2603_p11 = scmp.ne.s32.totalorder (!%p2602_p3), %s2586_s5, 0 }
  0x82   : > { %315 = sbr.rel (%p2602_p3) target bundleno = 1229 (0x4cd), region = 36  ;;  %s1221_s17 = sshll.u32 (!%p2602_p3), %s317_s22, 7 }
  0x83   : > { %s318_s3 = scalar_lea.sflag (!%p2602_p3), [#allocation3], %s317_s22  ;;  %s2174_s20 = scalar_lea.vmem (!%p2602_p3), [#allocation2], %s1221_s17 }
  0x89   : > { %1810 = dma.done.wait (%p2603_p11), %s318_s3, 2048  }
  0x8a   : > { %1812 = vsyncadd (%p2603_p11), %s318_s3, 4294965248  ;;  %p2604_p13 = scmp.ne.s32.totalorder %s2585_s16, 0 }
  0x8c   : > { %1814 = dma.done.wait (%p2604_p13), [#allocation6], 2048  }
  0x8d   : > { %1816 = vsyncadd (%p2604_p13), [#allocation6], 4294965248  ;;  %s2573_s13 = sand.u32 1, %s1843_s28   ;;  %s353_s15 = sand.u32 1, %s1831_s25  }
  0x8e   : > { %p376_p7 = scmp.lt.s32.totalorder %s1867_s11, 1  ;;  %s2200_s4 = scalar_lea.vmem [#allocation7], %s2573_s13 }
  0x8f   : > { %s2204_s29 = scalar_lea.vmem [#allocation8], %s353_s15  ;;  %p1223_p6 = scmp.ne.s32.totalorder %s1863_s10, 0 }
  0x90   : > { %s377_s18 = scalar_select %p376_p7, %s1867_s11, 1 }
  0x91   : > { %386 = sbr.rel (%p1223_p6) target bundleno = 152 (0x98), region = 48  ;;  %vm387_vm0 = vcmask (!%p1223_p6), 0   ;;  %v1887_v0 = vmov (!%p1223_p6), -1e+30   ;;  %v1888_v1 = vmov (!%p1223_p6), 0.0  }
  0x92   : > { %s2191_s5 = scalar_lea.vmem %s2553_s6, %s377_s18  ;;  %s2196_s16 = scalar_lea.vmem %s2554_s7, %s377_s18  ;;  %390 = vst [vmem:[%s2200_s4] sm:$0x1] (!%p1223_p6), %v1888_v1 }
  0x93   : > { %388 = vst.msk [vmem:[%s2191_s5] sm:$0x1] (!%p1223_p6), %vm387_vm0, %v1887_v0  ;;  %389 = vst.msk [vmem:[%s2196_s16] sm:$0x1] (!%p1223_p6), %vm387_vm0, %v1888_v1 }
  0x98 PF: > { %v1517_v2 = vld [vmem:[#allocation5 + $0x4] ss:$8 sps:$4 sm:$0xff]   ;;  %v1519_v3 = vld [vmem:[#allocation5] ss:$8 sps:$4 sm:$0xff]   ;;  %v1889_v4 = vmov 0   ;;  %s1224_s12 = sshll.u32 %s1867_s11, 1  ;;  %v410_v12 = vlaneseq }
  0x99   : > { %656 = vmatprep.mubr.bf16.mxu0 %v1889_v4  ;;  %1515 = vset.pattern.permute.xlu0 %v1889_v4  ;;  %v1520_v5 = vld [vmem:[#allocation5 + $0x14] ss:$8 sps:$4 sm:$0xff]   ;;  %v1522_v6 = vld [vmem:[#allocation5 + $0x10] ss:$8 sps:$4 sm:$0xff]   ;;  %v1523_v7 = vld [vmem:[#allocation5 + $0x24] ss:$8 sps:$4 sm:$0xff]   ;;  %s2215_s22 = sadd.s32 %s1863_s10, %s1224_s12 }
  0x9a   : > { %624 = vmatprep.subr.bf16.mxu0 %v1517_v2  ;;  %1516 = vset.pattern.permute.xlu1 %v1889_v4  ;;  %v1525_v8 = vld [vmem:[#allocation5 + $0x20] ss:$8 sps:$4 sm:$0xff]   ;;  %v1526_v9 = vld [vmem:[#allocation5 + $0x34] ss:$8 sps:$4 sm:$0xff]   ;;  %v1528_v10 = vld [vmem:[#allocation5 + $0x30] ss:$8 sps:$4 sm:$0xff]  }
  0x9b   : > { %625 = vmatpush1.bf16.msra.mxu0 %v1519_v3  ;;  %v1529_v11 = vld [vmem:[#allocation5 + $0x44] ss:$8 sps:$4 sm:$0xff]   ;;  %v1531_v13 = vld [vmem:[#allocation5 + $0x40] ss:$8 sps:$4 sm:$0xff]   ;;  %v1532_v14 = vld [vmem:[#allocation5 + $0x54] ss:$8 sps:$4 sm:$0xff]  }
  0x9c   : > { %626 = vmatprep.subr.bf16.mxu0 %v1520_v5  ;;  %v2218_v15 = vshrl.u32 %v410_v12, 7  ;;  %s1225_s17 = sshll.u32 %s2215_s22, 7  ;;  %v1534_v16 = vld [vmem:[#allocation5 + $0x50] ss:$8 sps:$4 sm:$0xff]   ;;  %v1535_v17 = vld [vmem:[#allocation5 + $0x64] ss:$8 sps:$4 sm:$0xff]  }
  0x9d   : > { %v2222_v19 = vstv %s1225_s17  ;;  %v1537_v20 = vld [vmem:[#allocation5 + $0x60] ss:$8 sps:$4 sm:$0xff]   ;;  %v1538_v21 = vld [vmem:[#allocation5 + $0x74] ss:$8 sps:$4 sm:$0xff]   ;;  %v1540_v24 = vld [vmem:[#allocation5 + $0x70] ss:$8 sps:$4 sm:$0xff]  }
  0x9e   : > { %v412_v18 = vadd.s32 8, %v2218_v15  ;;  %v428_v22 = vadd.s32 %v2222_v19, %v2218_v15  ;;  %v393_v25 = vld [vmem:[%s2174_s20] sm:$0xff]  ;;  %v394_v26 = vld [vmem:[%s2174_s20 + $0x8] sm:$0xff]  ;;  %v413_v27 = vadd.s32 16, %v2218_v15  ;;  %v414_v28 = vadd.s32 24, %v2218_v15  ;;  %v395_v33 = vld [vmem:[%s2174_s20 + $0x10] sm:$0xff] }
  0x9f   : > { %627 = vmatpush1.bf16.msra.mxu0 %v1522_v6  ;;  %v2231_v29 = vpack.c.bf16 %v394_v26, %v393_v25  ;;  %v396_v34 = vld [vmem:[%s2174_s20 + $0x18] sm:$0xff]  ;;  %v415_v35 = vadd.s32 32, %v2218_v15  ;;  %v416_v36 = vadd.s32 40, %v2218_v15  ;;  %v397_v41 = vld [vmem:[%s2174_s20 + $0x20] sm:$0xff]  ;;  %v398_v42 = vld [vmem:[%s2174_s20 + $0x28] sm:$0xff]  ;;  %v417_v43 = vadd.s32 48, %v2218_v15 }
  0xa0   : > { %628 = vmatprep.subr.bf16.mxu0 %v1523_v7  ;;  %v429_v23 = vadd.s32 %v2222_v19, %v412_v18  ;;  %vm444_vm1 = vcmp.lt.s32.totalorder %v428_v22, 300  ;;  %v430_v31 = vadd.s32 %v2222_v19, %v413_v27  ;;  %v431_v32 = vadd.s32 %v2222_v19, %v414_v28  ;;  %v399_v49 = vld [vmem:[%s2174_s20 + $0x30] sm:$0xff]  ;;  %v400_v50 = vld [vmem:[%s2174_s20 + $0x38] sm:$0xff]  ;;  %v401_v57 = vld [vmem:[%s2174_s20 + $0x40] sm:$0xff]  ;;  %s2621_s19 = sld [smem:[#allocation26_spill]]  ;;  %s1308_s24 = sshll.u32 %s2215_s22, 4 }
  0xa1   : > { %v2247_v37 = vpack.c.bf16 %v396_v34, %v395_v33  ;;  %v432_v39 = vadd.s32 %v2222_v19, %v415_v35  ;;  %v433_v40 = vadd.s32 %v2222_v19, %v416_v36  ;;  %v418_v44 = vadd.s32 56, %v2218_v15  ;;  %v402_v58 = vld [vmem:[%s2174_s20 + $0x48] sm:$0xff]  ;;  %v403_v1 = vld [vmem:[%s2174_s20 + $0x50] sm:$0xff]  ;;  %v404_v2 = vld [vmem:[%s2174_s20 + $0x58] sm:$0xff]  ;;  %s2622_s12 = sld [smem:[#allocation28_spill]]  ;;  %s1009_s3 = scalar_lea.sflag [#allocation9], %s353_s15 }
  0xa2   : > { %vm445_vm2 = vcmp.lt.s32.totalorder %v429_v23, 300  ;;  %vm446_vm4 = vcmp.lt.s32.totalorder %v430_v31, 300  ;;  %vm447_vm5 = vcmp.lt.s32.totalorder %v431_v32, 300  ;;  %v2263_v45 = vpack.c.bf16 %v398_v42, %v397_v41  ;;  %v408_v22 = vld [vmem:[%s2174_s20 + $0x78] sm:$0xff]  ;;  %v532_v26 = vld [vmem:[%s2549_s2] sm:$0x3] }
  0xa3   : > { %629 = vmatpush1.bf16.msra.mxu0 %v1525_v8  ;;  %vm2233_vm3 = vmpackc.low %vm445_vm2, %vm444_vm1  ;;  %vm448_vm7 = vcmp.lt.s32.totalorder %v432_v39, 300  ;;  %vm449_vm8 = vcmp.lt.s32.totalorder %v433_v40, 300  ;;  %v434_v47 = vadd.s32 %v2222_v19, %v417_v43  ;;  %v435_v48 = vadd.s32 %v2222_v19, %v418_v44  ;;  %p2624_p0 = scmp.ne.s32.totalorder %s2596_s21, 0  ;;  %s1892_s18 = smov [#allocation8]  }
  0xa4   : > { %630 = vmatprep.subr.bf16.mxu0 %v1526_v9  ;;  %vm2249_vm6 = vmpackc.low %vm447_vm5, %vm446_vm4  ;;  %v419_v51 = vadd.s32 64, %v2218_v15  ;;  %v420_v52 = vadd.s32 72, %v2218_v15  ;;  %v1252_v53 = vpack.c.bf16 %v400_v50, %v399_v49  ;;  %v421_v59 = vadd.s32 80, %v2218_v15 }
  0xa5   : > { %vm2265_vm9 = vmpackc.low %vm449_vm8, %vm448_vm7  ;;  %vm450_vm10 = vcmp.lt.s32.totalorder %v434_v47, 300  ;;  %vm451_vm11 = vcmp.lt.s32.totalorder %v435_v48, 300  ;;  %v422_v60 = vadd.s32 88, %v2218_v15  ;;  %v1255_v61 = vpack.c.bf16 %v402_v58, %v401_v57 }
  0xa6   : > { %vm2279_vm12 = vmpackc.low %vm451_vm11, %vm450_vm10  ;;  %v436_v55 = vadd.s32 %v2222_v19, %v419_v51  ;;  %v437_v56 = vadd.s32 %v2222_v19, %v420_v52  ;;  %v438_v63 = vadd.s32 %v2222_v19, %v421_v59  ;;  %v423_v3 = vadd.s32 96, %v2218_v15 }
  0xa7   : > { %631 = vmatpush1.bf16.msra.mxu0 %v1528_v10  ;;  %v439_v0 = vadd.s32 %v2222_v19, %v422_v60  ;;  %v424_v5 = vadd.s32 104, %v2218_v15  ;;  %v1258_v6 = vpack.c.bf16 %v404_v2, %v403_v1  ;;  %v405_v10 = vld [vmem:[%s2174_s20 + $0x60] sm:$0xff]  ;;  %v1890_v25 = vmov 0.0   ;;  %s2623_s17 = smov %s2622_s12  ;;  %s2433_s10 = scalar_lea.hbm %s2622_s12, %s1308_s24 }
  0xa8   : > { %632 = vmatprep.subr.bf16.mxu0 %v1529_v11  ;;  %vm452_vm13 = vcmp.lt.s32.totalorder %v436_v55, 300  ;;  %vm453_vm14 = vcmp.lt.s32.totalorder %v437_v56, 300  ;;  %vm454_vm0 = vcmp.lt.s32.totalorder %v438_v63, 300  ;;  %v440_v8 = vadd.s32 %v2222_v19, %v423_v3  ;;  %v406_v11 = vld [vmem:[%s2174_s20 + $0x68] sm:$0xff]  ;;  %1330 = vmatprep.subr.bf16.mxu1 %v1890_v25 }
  0xa9   : > { %vm2292_vm15 = vmpackc.low %vm453_vm14, %vm452_vm13  ;;  %vm455_vm1 = vcmp.lt.s32.totalorder %v439_v0, 300  ;;  %v441_v9 = vadd.s32 %v2222_v19, %v424_v5  ;;  %v2374_v35 = vsub.s32 0, %v2218_v15 }
  0xaa   : > { %vm2305_vm2 = vmpackc.low %vm455_vm1, %vm454_vm0  ;;  %vm456_vm4 = vcmp.lt.s32.totalorder %v440_v8, 300 }
  0xab   : > { %633 = vmatpush1.bf16.msra.mxu0 %v1531_v13  ;;  %vm457_vm5 = vcmp.lt.s32.totalorder %v441_v9, 300  ;;  %v425_v13 = vadd.s32 112, %v2218_v15  ;;  %v2377_v39 = vrot.slane %v532_v26, %v2374_v35 }
  0xac   : > { %634 = vmatprep.subr.bf16.mxu0 %v1532_v14  ;;  %v426_v14 = vadd.s32 120, %v2218_v15  ;;  %vm2318_vm7 = vmpackc.low %vm457_vm5, %vm456_vm4 }
  0xad   : > { %v442_v18 = vadd.s32 %v2222_v19, %v425_v13 }
  0xaf   : > { %635 = vmatpush1.bf16.msra.mxu0 %v1534_v16  ;;  %v1261_v16 = vpack.c.bf16 %v406_v11, %v405_v10  ;;  %vm458_vm8 = vcmp.lt.s32.totalorder %v442_v18, 300 }
  0xb0   : > { %636 = vmatprep.subr.bf16.mxu0 %v1535_v17 }
  0xb3   : > { %637 = vmatpush1.bf16.msra.mxu0 %v1537_v20  ;;  %v443_v20 = vadd.s32 %v2222_v19, %v426_v14 }
  0xb4   : > { %638 = vmatprep.subr.bf16.mxu0 %v1538_v21  ;;  %v407_v21 = vld [vmem:[%s2174_s20 + $0x70] sm:$0xff] }
  0xb5   : > { %vm459_vm10 = vcmp.lt.s32.totalorder %v443_v20, 300  ;;  %v1264_v23 = vpack.c.bf16 %v408_v22, %v407_v21 }
  0xb6   : > { %vm2329_vm11 = vmpackc.low %vm459_vm10, %vm458_vm8 }
  0xb7   : > { %639 = vmatpush1.bf16.msra.mxu0 %v1540_v24 }
  0xb8   : > { %1350 = vmatprep.subr.bf16.mxu0 %v1890_v25 }
  0xba   : > { %1244 = vmatmul.mubr.msk.bf16.vlgmr.msra.gmra.mrb[0].mxu0 %vm2233_vm3, %v2231_v29 }
  0xbb   : > { %666 = vmatprep.mubr.bf16.mxu0 %v1889_v4  ;;  %1351 = vmatpush3.bf16.msk.msra.mxu0 %vm2233_vm3, %v2231_v29  ;;  %vm1891_vm3 = vmmov 0  }
  0xbc   : > { %1352 = vmatprep.subr.bf16.mxu0 %v1890_v25  ;;  %1346 = vmatprep.mubr.msk.bf16.mxu1 %vm1891_vm3, %v1890_v25 }
  0xbf   : > { %1353 = vmatpush3.bf16.msk.msra.mxu0 %vm2249_vm6, %v2247_v37 }
  0xc0   : > { %1354 = vmatprep.subr.bf16.mxu0 %v1890_v25 }
  0xc2   : > { %1247 = vmatmul.mubr.msk.bf16.gmra.mrb[4].mxu0 %vm2249_vm6, %v2247_v37 }
  0xc3   : > { %676 = vmatprep.mubr.bf16.mxu0 %v1889_v4  ;;  %1355 = vmatpush3.bf16.msk.msra.mxu0 %vm2265_vm9, %v2263_v45 }
  0xc4   : > { %1356 = vmatprep.subr.bf16.mxu0 %v1890_v25 }
  0xc7   : > { %1357 = vmatpush3.bf16.msk.msra.mxu0 %vm2279_vm12, %v1252_v53 }
  0xc8   : > { %1358 = vmatprep.subr.bf16.mxu0 %v1890_v25 }
  0xca   : > { %1250 = vmatmul.mubr.msk.bf16.gmra.mrb[8].mxu0 %vm2265_vm9, %v2263_v45  ;;  %vm921_vm9 = vcmask 1040384  }
  0xcb   : > { %686 = vmatprep.mubr.bf16.mxu0 %v1889_v4  ;;  %1359 = vmatpush3.bf16.msk.msra.mxu0 %vm2292_vm15, %v1255_v61 }
  0xcc   : > { %1360 = vmatprep.subr.bf16.mxu0 %v1890_v25 }
  0xcf   : > { %1361 = vmatpush3.bf16.msk.msra.mxu0 %vm2305_vm2, %v1258_v6 }
  0xd0   : > { %1362 = vmatprep.subr.bf16.mxu0 %v1890_v25 }
  0xd2   : > { %1253 = vmatmul.mubr.msk.bf16.gmra.mrb[12].mxu0 %vm2279_vm12, %v1252_v53  ;;  %vm947_vm12 = vcmask 0  }
  0xd3   : > { %696 = vmatprep.mubr.bf16.mxu0 %v1889_v4  ;;  %1363 = vmatpush3.bf16.msk.msra.mxu0 %vm2318_vm7, %v1261_v16 }
  0xd4   : > { %1364 = vmatprep.subr.bf16.mxu0 %v1890_v25 }
  0xd7   : > { %1365 = vmatpush3.bf16.msk.msra.mxu0 %vm2329_vm11, %v1264_v23 }
  0xda   : > { %1256 = vmatmul.mubr.msk.bf16.gmra.mrb[16].mxu0 %vm2292_vm15, %v1255_v61 }
  0xdb   : > { %706 = vmatprep.mubr.bf16.mxu0 %v1889_v4 }
  0xe2   : > { %1259 = vmatmul.mubr.msk.bf16.gmra.mrb[20].mxu0 %vm2305_vm2, %v1258_v6 }
  0xe3   : > { %716 = vmatprep.mubr.bf16.mxu0 %v1889_v4 }
  0xea   : > { %1262 = vmatmul.mubr.msk.bf16.gmra.mrb[24].mxu0 %vm2318_vm7, %v1261_v16 }
  0xeb   : > { %726 = vmatprep.mubr.bf16.mxu0 %v1889_v4  ;;  %v540_v4 = vsub.s32 1, %v2218_v15 }
  0xed   : > { %v2369_v27 = vrot.slane %v532_v26, %v540_v4 }
  0xf2   : > { %1265 = vmatmul.mubr.msk.bf16.gmra.mrb[28].mxu0 %vm2329_vm11, %v1264_v23 }
  0xf3   : > { %1366 = vmatprep.mubr.msk.bf16.mxu0 %vm1891_vm3, %v1890_v25 }
 0x18d   : > { %v658_v28 = vpop.f32.mrb[0].mxu0 }
 0x18e   : > { %v660_v29 = vpop.f32.mrb[1].mxu0  ;;  %v659_v45 = vadd.f32 %v658_v28, %v2377_v39 }
 0x18f   : > { %v661_v30 = vadd.f32 %v660_v29, %v2369_v27  ;;  %v662_v31 = vpop.f32.mrb[2].mxu0 }
 0x190   : > { %v664_v32 = vpop.f32.mrb[3].mxu0  ;;  %v663_v47 = vadd.f32 %v662_v31, %v2377_v39 }
 0x191   : > { %v1266_v33 = vmul.f32 -1.442695, %v661_v30  ;;  %v665_v34 = vadd.f32 %v664_v32, %v2369_v27 }
 0x193   : > { %1541 = vpow2.f32 %v1266_v33  ;;  %v1267_v36 = vmul.f32 -1.442695, %v665_v34 }
 0x195   : > { %1543 = vpow2.f32 %v1267_v36  ;;  %v668_v37 = vpop.f32.mrb[4].mxu0 }
 0x196   : > { %v670_v38 = vpop.f32.mrb[5].mxu0  ;;  %v669_v58 = vadd.f32 %v668_v37, %v2377_v39 }
 0x197   : > { %v671_v40 = vadd.f32 %v670_v38, %v2369_v27  ;;  %v672_v41 = vpop.f32.mrb[6].mxu0 }
 0x198   : > { %v674_v42 = vpop.f32.mrb[7].mxu0  ;;  %v673_v61 = vadd.f32 %v672_v41, %v2377_v39 }
 0x199   : > { %v1268_v43 = vmul.f32 -1.442695, %v671_v40  ;;  %v675_v44 = vadd.f32 %v674_v42, %v2369_v27 }
 0x19b   : > { %1545 = vpow2.f32 %v1268_v43  ;;  %v1269_v15 = vmul.f32 -1.442695, %v675_v44 }
 0x19d   : > { %v1542_v46 = vpop.eup %1541  ;;  %1547 = vpow2.f32 %v1269_v15  ;;  %v678_v48 = vpop.f32.mrb[8].mxu0 }
 0x19e   : > { %v801_v49 = vadd.f32 1.0, %v1542_v46  ;;  %v680_v50 = vpop.f32.mrb[9].mxu0  ;;  %1549 = vtanh.f32 %v659_v45  ;;  %v679_v13 = vadd.f32 %v678_v48, %v2377_v39 }
 0x19f   : > { %v1544_v51 = vpop.eup %1543  ;;  %v681_v52 = vadd.f32 %v680_v50, %v2369_v27  ;;  %v682_v53 = vpop.f32.mrb[10].mxu0 }
 0x1a0   : > { %1551 = vrcp.f32 %v801_v49  ;;  %v802_v54 = vadd.f32 1.0, %v1544_v51  ;;  %v684_v55 = vpop.f32.mrb[11].mxu0  ;;  %v683_v20 = vadd.f32 %v682_v53, %v2377_v39 }
 0x1a1   : > { %1553 = vtanh.f32 %v663_v47  ;;  %v1270_v56 = vmul.f32 -1.442695, %v681_v52  ;;  %v685_v57 = vadd.f32 %v684_v55, %v2369_v27 }
 0x1a2   : > { %1555 = vrcp.f32 %v802_v54 }
 0x1a3   : > { %1557 = vpow2.f32 %v1270_v56  ;;  %v1271_v59 = vmul.f32 -1.442695, %v685_v57 }
 0x1a5   : > { %v1546_v60 = vpop.eup %1545  ;;  %1559 = vpow2.f32 %v1271_v59  ;;  %v688_v62 = vpop.f32.mrb[12].mxu0 }
 0x1a6   : > { %v803_v63 = vadd.f32 1.0, %v1546_v60  ;;  %v690_v0 = vpop.f32.mrb[13].mxu0  ;;  %1561 = vtanh.f32 %v669_v58  ;;  %v689_v38 = vadd.f32 %v688_v62, %v2377_v39 }
 0x1a7   : > { %v1548_v1 = vpop.eup %1547  ;;  %v691_v2 = vadd.f32 %v690_v0, %v2369_v27  ;;  %v692_v3 = vpop.f32.mrb[14].mxu0 }
 0x1a8   : > { %1563 = vrcp.f32 %v803_v63  ;;  %v804_v5 = vadd.f32 1.0, %v1548_v1  ;;  %v694_v6 = vpop.f32.mrb[15].mxu0  ;;  %v1550_v7 = vpop.eup %1549  ;;  %v693_v44 = vadd.f32 %v692_v3, %v2377_v39 }
 0x1a9   : > { %1565 = vtanh.f32 %v673_v61  ;;  %v1272_v8 = vmul.f32 -1.442695, %v691_v2  ;;  %v695_v9 = vadd.f32 %v694_v6, %v2369_v27 }
 0x1aa   : > { %v1552_v10 = vpop.eup %1551  ;;  %1567 = vrcp.f32 %v804_v5 }
 0x1ab   : > { %v1554_v11 = vpop.eup %1553  ;;  %1569 = vpow2.f32 %v1272_v8  ;;  %v1273_v14 = vmul.f32 -1.442695, %v695_v9  ;;  %v849_v16 = vmul.f32 %v1552_v10, %v1550_v7 }
 0x1ac   : > { %v1556_v17 = vpop.eup %1555 }
 0x1ad   : > { %v1558_v18 = vpop.eup %1557  ;;  %1571 = vpow2.f32 %v1273_v14  ;;  %v698_v21 = vpop.f32.mrb[16].mxu0  ;;  %v850_v22 = vmul.f32 %v1556_v17, %v1554_v11 }
 0x1ae   : > { %v805_v23 = vadd.f32 1.0, %v1558_v18  ;;  %v700_v24 = vpop.f32.mrb[17].mxu0  ;;  %1573 = vtanh.f32 %v679_v13  ;;  %v699_v59 = vadd.f32 %v698_v21, %v2377_v39 }
 0x1af   : > { %v1560_v4 = vpop.eup %1559  ;;  %v701_v26 = vadd.f32 %v700_v24, %v2369_v27  ;;  %v702_v28 = vpop.f32.mrb[18].mxu0  ;;  %v865_v29 = vpack.c.bf16 %v850_v22, %v849_v16 }
 0x1b0   : > { %1575 = vrcp.f32 %v805_v23  ;;  %v806_v30 = vadd.f32 1.0, %v1560_v4  ;;  %v704_v31 = vpop.f32.mrb[19].mxu0  ;;  %v1562_v32 = vpop.eup %1561  ;;  %v703_v0 = vadd.f32 %v702_v28, %v2377_v39 }
 0x1b1   : > { %1577 = vtanh.f32 %v683_v20  ;;  %v1274_v33 = vmul.f32 -1.442695, %v701_v26  ;;  %v705_v34 = vadd.f32 %v704_v31, %v2369_v27  ;;  %1331 = vmatpush3.bf16.xpose.msra.mxu1 %v865_v29 }
 0x1b2   : > { %v1564_v36 = vpop.eup %1563  ;;  %1579 = vrcp.f32 %v806_v30  ;;  %1332 = vmatprep.subr.bf16.mxu1 %v1890_v25 }
 0x1b3   : > { %v1566_v37 = vpop.eup %1565  ;;  %1581 = vpow2.f32 %v1274_v33  ;;  %v1275_v40 = vmul.f32 -1.442695, %v705_v34  ;;  %v851_v41 = vmul.f32 %v1564_v36, %v1562_v32 }
 0x1b4   : > { %v1568_v42 = vpop.eup %1567 }
 0x1b5   : > { %v1570_v43 = vpop.eup %1569  ;;  %1583 = vpow2.f32 %v1275_v40  ;;  %v708_v45 = vpop.f32.mrb[20].mxu0  ;;  %v852_v15 = vmul.f32 %v1568_v42, %v1566_v37 }
 0x1b6   : > { %v807_v46 = vadd.f32 1.0, %v1570_v43  ;;  %v710_v47 = vpop.f32.mrb[21].mxu0  ;;  %1585 = vtanh.f32 %v689_v38  ;;  %v709_v20 = vadd.f32 %v708_v45, %v2377_v39 }
 0x1b7   : > { %v1572_v48 = vpop.eup %1571  ;;  %v711_v49 = vadd.f32 %v710_v47, %v2369_v27  ;;  %v712_v50 = vpop.f32.mrb[22].mxu0  ;;  %v866_v51 = vpack.c.bf16 %v852_v15, %v851_v41 }
 0x1b8   : > { %1587 = vrcp.f32 %v807_v46  ;;  %v808_v52 = vadd.f32 1.0, %v1572_v48  ;;  %v714_v53 = vpop.f32.mrb[23].mxu0  ;;  %v1574_v54 = vpop.eup %1573  ;;  %v713_v4 = vadd.f32 %v712_v50, %v2377_v39 }
 0x1b9   : > { %1589 = vtanh.f32 %v693_v44  ;;  %v1276_v55 = vmul.f32 -1.442695, %v711_v49  ;;  %v715_v56 = vadd.f32 %v714_v53, %v2369_v27  ;;  %1333 = vmatpush3.bf16.xpose.msra.mxu1 %v866_v51 }
 0x1ba   : > { %v1576_v57 = vpop.eup %1575  ;;  %1591 = vrcp.f32 %v808_v52  ;;  %1334 = vmatprep.subr.bf16.mxu1 %v1890_v25 }
 0x1bb   : > { %v1578_v58 = vpop.eup %1577  ;;  %1593 = vpow2.f32 %v1276_v55  ;;  %v1277_v60 = vmul.f32 -1.442695, %v715_v56  ;;  %v853_v61 = vmul.f32 %v1576_v57, %v1574_v54 }
 0x1bc   : > { %v1580_v62 = vpop.eup %1579 }
 0x1bd   : > { %v1582_v63 = vpop.eup %1581  ;;  %1595 = vpow2.f32 %v1277_v60  ;;  %v718_v1 = vpop.f32.mrb[24].mxu0  ;;  %v854_v2 = vmul.f32 %v1580_v62, %v1578_v58 }
 0x1be   : > { %v809_v3 = vadd.f32 1.0, %v1582_v63  ;;  %v720_v5 = vpop.f32.mrb[25].mxu0  ;;  %1597 = vtanh.f32 %v699_v59  ;;  %v719_v44 = vadd.f32 %v718_v1, %v2377_v39 }
 0x1bf   : > { %v1584_v6 = vpop.eup %1583  ;;  %v721_v7 = vadd.f32 %v720_v5, %v2369_v27  ;;  %v722_v8 = vpop.f32.mrb[26].mxu0  ;;  %v867_v9 = vpack.c.bf16 %v854_v2, %v853_v61 }
 0x1c0   : > { %1599 = vrcp.f32 %v809_v3  ;;  %v810_v10 = vadd.f32 1.0, %v1584_v6  ;;  %v724_v11 = vpop.f32.mrb[27].mxu0  ;;  %v1586_v13 = vpop.eup %1585  ;;  %v723_v48 = vadd.f32 %v722_v8, %v2377_v39 }
 0x1c1   : > { %1601 = vtanh.f32 %v703_v0  ;;  %v1278_v14 = vmul.f32 -1.442695, %v721_v7  ;;  %v725_v16 = vadd.f32 %v724_v11, %v2369_v27  ;;  %1335 = vmatpush3.bf16.xpose.msra.mxu1 %v867_v9 }
 0x1c2   : > { %v1588_v17 = vpop.eup %1587  ;;  %1603 = vrcp.f32 %v810_v10  ;;  %1336 = vmatprep.subr.bf16.mxu1 %v1890_v25 }
 0x1c3   : > { %v1590_v18 = vpop.eup %1589  ;;  %1605 = vpow2.f32 %v1278_v14  ;;  %v1279_v21 = vmul.f32 -1.442695, %v725_v16  ;;  %v855_v22 = vmul.f32 %v1588_v17, %v1586_v13 }
 0x1c4   : > { %v1592_v23 = vpop.eup %1591 }
 0x1c5   : > { %v1594_v24 = vpop.eup %1593  ;;  %1607 = vpow2.f32 %v1279_v21  ;;  %v728_v26 = vpop.f32.mrb[28].mxu0  ;;  %v856_v28 = vmul.f32 %v1592_v23, %v1590_v18  ;;  %v873_v18 = vld [vmem:[%s2621_s19] sm:$0x1]  ;;  %s1701_s19 = sshll.u32 %s1892_s18, 4  ;;  %s1702_s19 = int_to_ptr.vmem [resolvable:$false] %s1701_s19 }
 0x1c6   : > { %v811_v29 = vadd.f32 1.0, %v1594_v24  ;;  %v730_v30 = vpop.f32.mrb[29].mxu0  ;;  %1609 = vtanh.f32 %v709_v20  ;;  %v729_v56 = vadd.f32 %v728_v26, %v2377_v39  ;;  %v915_v20 = vand.u32 127, %v410_v12  ;;  %s1703_s13 = scalar_lea.vmem %s1702_s19, 32 }
 0x1c7   : > { %v1596_v31 = vpop.eup %1595  ;;  %v731_v32 = vadd.f32 %v730_v30, %v2369_v27  ;;  %v732_v33 = vpop.f32.mrb[30].mxu0  ;;  %v868_v34 = vpack.c.bf16 %v856_v28, %v855_v22  ;;  %v920_v28 = vld [vmem:[%s2191_s5] sm:$0x1] }
 0x1c8   : > { %1611 = vrcp.f32 %v811_v29  ;;  %v812_v36 = vadd.f32 1.0, %v1596_v31  ;;  %v734_v37 = vpop.f32.mrb[31].mxu0  ;;  %v1598_v38 = vpop.eup %1597  ;;  %v733_v60 = vadd.f32 %v732_v33, %v2377_v39  ;;  %v916_v21 = vadd.s32 %v915_v20, %v2222_v19 }
 0x1c9   : > { %1613 = vtanh.f32 %v713_v4  ;;  %v1280_v40 = vmul.f32 -1.442695, %v731_v32  ;;  %v735_v41 = vadd.f32 %v734_v37, %v2369_v27  ;;  %1337 = vmatpush3.bf16.xpose.msra.mxu1 %v868_v34 }
 0x1ca   : > { %v1600_v42 = vpop.eup %1599  ;;  %1615 = vrcp.f32 %v812_v36  ;;  %1338 = vmatprep.subr.bf16.mxu1 %v1890_v25  ;;  %vm917_vm6 = vcmp.lt.s32.totalorder %v916_v21, 300 }
 0x1cb   : > { %v1602_v43 = vpop.eup %1601  ;;  %1617 = vpow2.f32 %v1280_v40  ;;  %v1281_v45 = vmul.f32 -1.442695, %v735_v41  ;;  %v857_v15 = vmul.f32 %v1600_v42, %v1598_v38 }
 0x1cc   : > { %v1604_v46 = vpop.eup %1603 }
 0x1cd   : > { %v1606_v47 = vpop.eup %1605  ;;  %1619 = vpow2.f32 %v1281_v45  ;;  %v858_v49 = vmul.f32 %v1604_v46, %v1602_v43 }
 0x1ce   : > { %v813_v50 = vadd.f32 1.0, %v1606_v47  ;;  %1621 = vtanh.f32 %v719_v44 }
 0x1cf   : > { %v1608_v51 = vpop.eup %1607  ;;  %v869_v27 = vpack.c.bf16 %v858_v49, %v857_v15 }
 0x1d0   : > { %1623 = vrcp.f32 %v813_v50  ;;  %v814_v52 = vadd.f32 1.0, %v1608_v51  ;;  %v1610_v53 = vpop.eup %1609 }
 0x1d1   : > { %1625 = vtanh.f32 %v723_v48  ;;  %1339 = vmatpush3.bf16.xpose.msra.mxu1 %v869_v27 }
 0x1d2   : > { %v1612_v54 = vpop.eup %1611  ;;  %1627 = vrcp.f32 %v814_v52  ;;  %1340 = vmatprep.subr.bf16.mxu1 %v1890_v25 }
 0x1d3   : > { %v1614_v55 = vpop.eup %1613  ;;  %v859_v57 = vmul.f32 %v1612_v54, %v1610_v53  ;;  %1629 = vtanh.f32 %v729_v56 }
 0x1d4   : > { %v1616_v58 = vpop.eup %1615 }
 0x1d5   : > { %v1618_v59 = vpop.eup %1617  ;;  %v860_v61 = vmul.f32 %v1616_v58, %v1614_v55 }
 0x1d6   : > { %v815_v62 = vadd.f32 1.0, %v1618_v59 }
 0x1d7   : > { %v1620_v63 = vpop.eup %1619  ;;  %v870_v0 = vpack.c.bf16 %v860_v61, %v859_v57 }
 0x1d8   : > { %1631 = vrcp.f32 %v815_v62  ;;  %v816_v1 = vadd.f32 1.0, %v1620_v63  ;;  %v1622_v2 = vpop.eup %1621 }
 0x1d9   : > { %1633 = vtanh.f32 %v733_v60  ;;  %1341 = vmatpush3.bf16.xpose.msra.mxu1 %v870_v0 }
 0x1da   : > { %v1624_v3 = vpop.eup %1623  ;;  %1635 = vrcp.f32 %v816_v1  ;;  %1342 = vmatprep.subr.bf16.mxu1 %v1890_v25 }
 0x1db   : > { %v1626_v5 = vpop.eup %1625  ;;  %v861_v6 = vmul.f32 %v1624_v3, %v1622_v2 }
 0x1dc   : > { %v1628_v7 = vpop.eup %1627 }
 0x1dd   : > { %v862_v8 = vmul.f32 %v1628_v7, %v1626_v5  ;;  %v1630_v39 = vpop.eup %1629 }
 0x1df   : > { %v871_v9 = vpack.c.bf16 %v862_v8, %v861_v6 }
 0x1e1   : > { %1343 = vmatpush3.bf16.xpose.msra.mxu1 %v871_v9 }
 0x1e2   : > { %v1632_v10 = vpop.eup %1631  ;;  %1344 = vmatprep.subr.bf16.mxu1 %v1890_v25 }
 0x1e3   : > { %v1634_v11 = vpop.eup %1633  ;;  %v863_v13 = vmul.f32 %v1632_v10, %v1630_v39 }
 0x1e4   : > { %v1636_v14 = vpop.eup %1635 }
 0x1e5   : > { %v864_v16 = vmul.f32 %v1636_v14, %v1634_v11 }
 0x1e7   : > { %v872_v17 = vpack.c.bf16 %v864_v16, %v863_v13 }
 0x1e9   : > { %1345 = vmatpush3.bf16.xpose.msra.mxu1 %v872_v17 }
 0x1f0   : > { %1347 = vmatmul.mubr.bf16.vlgmr.msra.gmra.mrb[0].mxu1 %v873_v18 }
 0x2c3   : > { %v908_v25 = vpop.f32.mrb[0].mxu1 }
 0x2c4   : > { %v918_v22 = vsel %vm917_vm6, %v908_v25, -1e+30  ;;  %v1348_v23 = vpop.f32.mrb[1].mxu1 }
 0x2c5   : > { %919 = vst [vmem:[%s2204_s29] sm:$0x1] %v918_v22  ;;  %v911_v24 = vpop.f32.mrb[2].mxu1  ;;  %v922_v4 = vsel %vm921_vm9, %v918_v22, -inf }
 0x2c6   : > { %923 = vmax.xlane.f32.xlu0 %v922_v4  ;;  %v1349_v26 = vpop.f32.mrb[3].mxu1 }
 0x353   : > { %v924_v29 = vpop.xlane.xlu0 %923 }
 0x354   : > { %v925_v30 = vmax.f32 %v920_v28, %v924_v29 }
 0x356   : > { %v926_v31 = vsub.f32 %v920_v28, %v925_v30  ;;  %1003 = vst.msk [vmem:[%s2191_s5] sm:$0x1] %vm947_vm12, %v925_v30  ;;  %931 = vperm.xlu0 %1515, %v925_v30   ;;  %s1042_s5 = sshll.u32 %s2204_s29, 4  ;;  %s1043_s5 = int_to_ptr.vmem [resolvable:$true] %s1042_s5 }
 0x357   : > { %s1697_s20 = scalar_lea.vmem %s1043_s5, 16  ;;  %p1704_p8 = scmp.lt.s32.totalorder %s1043_s5, %s1702_s19 }
 0x358   : > { %v927_v38 = vmul.f32 1.442695, %v926_v31  ;;  %p1698_p10 = scmp.ne.s32.totalorder %s1043_s5, %s1697_s20  ;;  %p1705_p5 = scmp.lt.s32.totalorder %s1703_s13, %s1697_s20 }
 0x35a   : > { %p1699_p4 = pnand %p1698_p10, %p2624_p0  ;;  %p1706_p9 = por %p1705_p5, %p1704_p8 }
 0x35c   : > { %p1700_p1 = pneg %p1699_p4 }
 0x35e   : > { %p1707_p2 = pnand %p1706_p9, %p1700_p1 }
 0x3d5   : > { %v932_v12 = vpop.permute.xlu0 %931 }
 0x3d6   : > { %v937_v19 = vrot.slane %v932_v12, %v2374_v35 }
 0x3d8   : > { %v938_v32 = vsub.f32 %v918_v22, %v937_v19 }
 0x3da   : > { %v939_v33 = vmul.f32 1.442695, %v938_v32 }
 0x3dc   : > { %1637 = vpow2.f32 %v939_v33 }
 0x3dd   : > { %1639 = vpow2.f32 %v927_v38 }
 0x3e6   : > { %v1638_v34 = vpop.eup %1637 }
 0x3e7   : > { %v943_v36 = vsel %vm921_vm9, %v1638_v34, 0.0  ;;  %v960_v37 = vpack.c.bf16 %v1638_v34, %v1638_v34  ;;  %v1640_v40 = vpop.eup %1639 }
 0x3e8   : > { %944 = vadd.xlane.f32.xlu1 %v943_v36 }
 0x3e9   : > { %1367 = vmatmul.mubr.bf16.vlgmr.msra.gmra.mrb[32].mxu0 %v960_v37 }
 0x3f9   : > { %952 = vperm.xlu1 %1516, %v1640_v40  }
 0x3fa   : > { %1710 = shalt.err (!%p1707_p2)
}
 0x3fb   : > { %s1711_s15 = scalar_lea.hbm %s2433_s10, 16  ;;  %s1715_s24 = scalar_lea.hbm %s2623_s17, 64 }
 0x3fc   : > { %p1712_p12 = scmp.ne.s32.totalorder %s2433_s10, %s1711_s15  ;;  %p1716_p13 = scmp.lt.u32.totalorder %s2433_s10, %s2623_s17 }
 0x3fd   : > { %p1717_p7 = scmp.lt.u32.totalorder %s1715_s24, %s1711_s15  ;;  %p1719_p10 = scmp.lt.u32.totalorder %s1711_s15, %s2433_s10 }
 0x3fe   : > { %p1713_p3 = pnand %p1712_p12, %p2624_p0 }
 0x3ff   : > { %p1718_p6 = por %p1717_p7, %p1716_p13 }
 0x400   : > { %p1714_p11 = pneg %p1713_p3 }
 0x401   : > { %p1720_p4 = por %p1719_p10, %p1718_p6 }
 0x403   : > { %p1721_p1 = pnand %p1720_p4, %p1714_p11 }
 0x405   : > { %1724 = shalt.err (!%p1721_p1)
}
 0x406   : > { %1376 = dma.vmem_to_hbm [thread:$0]  (%p2624_p0), %s1043_s5, 16, %s2433_s10, %s1009_s3   ;;  %v941_v41 = vld [vmem:[%s2196_s16] sm:$0x1] }
 0x407   : > { %v942_v42 = vmul.f32 %v1640_v40, %v941_v41  ;;  %v949_v46 = vld [vmem:[%s2200_s4] sm:$0x1]  ;;  %s1306_s21 = sshll.u32 %s1867_s11, 4  ;;  %s1027_s13 = sshll.u32 %s2200_s4, 4  ;;  %s2466_s13 = int_to_ptr.vmem [resolvable:$true] %s1027_s13 }
 0x408   : > { %s2625_s10 = sld [smem:[#allocation27_spill]]  ;;  %s1725_s18 = scalar_lea.vmem %s2466_s13, 16 }
 0x409   : > { %p1726_p0 = scmp.ne.s32.totalorder %s2466_s13, %s1725_s18  ;;  %p2628_p8 = scmp.ne.s32.totalorder %s2592_s30, 0 }
 0x40a   : > { %s1893_s19 = smov [#allocation7]  }
 0x40b   : > { %p1727_p5 = pnand %p1726_p0, %p2628_p8  ;;  %s1729_s15 = sshll.u32 %s1893_s19, 4  ;;  %s1730_s15 = int_to_ptr.vmem [resolvable:$false] %s1729_s15 }
 0x40c   : > { %s1731_s29 = scalar_lea.vmem %s1730_s15, 32  ;;  %p1732_p2 = scmp.lt.s32.totalorder %s2466_s13, %s1730_s15 }
 0x40d   : > { %p1728_p9 = pneg %p1727_p5  ;;  %p1733_p12 = scmp.lt.s32.totalorder %s1731_s29, %s1725_s18 }
 0x40e   : > { %s2626_s3 = smov %s2625_s10  ;;  %s2464_s20 = scalar_lea.hbm %s2625_s10, %s1306_s21 }
 0x40f   : > { %p1734_p3 = por %p1733_p12, %p1732_p2 }
 0x411   : > { %p1735_p11 = pnand %p1734_p3, %p1728_p9 }
 0x475   : > { %v945_v43 = vpop.xlane.xlu1 %944 }
 0x476   : > { %v946_v44 = vadd.f32 %v945_v43, %v942_v42 }
 0x478   : > { %948 = vst.msk [vmem:[%s2196_s16] sm:$0x1] %vm947_vm12, %v946_v44  ;;  %s2627_s16 = sand.u32 1, %s1843_s28  }
 0x479   : > { %v953_v45 = vpop.permute.xlu1 %952  ;;  %s1005_s11 = scalar_lea.sflag [#allocation4], %s2627_s16 }
 0x47a   : > { %v958_v15 = vrot.slane %v953_v45, %v2374_v35 }
 0x47c   : > { %v959_v47 = vmul.f32 %v958_v15, %v949_v46 }
 0x4bc   : > { %v995_v48 = vpop.f32.mrb[32].mxu0 }
 0x4bd   : > { %v1001_v49 = vadd.f32 %v995_v48, %v959_v47  ;;  %v1368_v50 = vpop.f32.mrb[33].mxu0 }
 0x4be   : > { %v998_v51 = vpop.f32.mrb[34].mxu0 }
 0x4bf   : > { %1002 = vst [vmem:[%s2200_s4] sm:$0x1] %v1001_v49  ;;  %v1369_v35 = vpop.f32.mrb[35].mxu0 }
 0x4c0   : > { %1738 = shalt.err (!%p1735_p11)
}
 0x4c1   : > { %s1739_s4 = scalar_lea.hbm %s2464_s20, 16  ;;  %s1743_s23 = scalar_lea.hbm %s2626_s3, 32 }
 0x4c2   : > { %p1740_p13 = scmp.ne.s32.totalorder %s2464_s20, %s1739_s4  ;;  %p1744_p10 = scmp.lt.u32.totalorder %s2464_s20, %s2626_s3 }
 0x4c3   : > { %p1745_p4 = scmp.lt.u32.totalorder %s1743_s23, %s1739_s4  ;;  %p1747_p0 = scmp.lt.u32.totalorder %s1739_s4, %s2464_s20 }
 0x4c4   : > { %p1741_p7 = pnand %p1740_p13, %p2628_p8 }
 0x4c5   : > { %p1746_p1 = por %p1745_p4, %p1744_p10 }
 0x4c6   : > { %p1742_p6 = pneg %p1741_p7 }
 0x4c7   : > { %p1748_p5 = por %p1747_p0, %p1746_p1 }
 0x4c9   : > { %p1749_p9 = pnand %p1748_p5, %p1742_p6 }
 0x4cb   : > { %1752 = shalt.err (!%p1749_p9)
}
 0x4cc   : > { %1375 = dma.vmem_to_hbm [thread:$0]  (%p2628_p8), %s2466_s13, 16, %s2464_s20, %s1005_s11  }
 0x4cd PF: > { %s2629_s5 = sld [smem:[#allocation23_spill]]  ;;  %p1392_p2 = scmp.ge.s32.totalorder %s1879_s14, 2 }
 0x4ce   : > { %s1060_s12 = sand.u32 1, %s1839_s27  }
 0x4cf   : > { %s1061_s10 = scalar_lea.sflag [#allocation4], %s1060_s12 }
 0x4d3   : > { %p2630_p12 = scmp.ne.s32.totalorder %s2629_s5, 0 }
 0x4d5   : > { %p1384_p3 = pnand %p1392_p2, %p2630_p12 }
 0x4d7   : > { %1818 = dma.done.wait (!%p1384_p3), %s1061_s10, 16  }
 0x4d8   : > { %1820 = vsyncadd (!%p1384_p3), %s1061_s10, 4294967280  ;;  %s2631_s16 = sld [smem:[#allocation14_spill]]  ;;  %s2632_s18 = sld [smem:[#allocation25_spill]] }
 0x4de   : > { %s1068_s19 = sand.u32 1, %s2631_s16   ;;  %p2633_p11 = scmp.ne.s32.totalorder %s2632_s18, 0 }
 0x4df   : > { %s1069_s30 = scalar_lea.sflag [#allocation9], %s1068_s19 }
 0x4e0   : > { %p1387_p13 = pnand %p1392_p2, %p2633_p11 }
 0x4e2   : > { %1822 = dma.done.wait (!%p1387_p13), %s1069_s30, 16  }
 0x4e3   : > { %1824 = vsyncadd (!%p1387_p13), %s1069_s30, 4294967280  ;;  %s28_s14 = sadd.s32 1, %s1879_s14   ;;  %s2635_s27 = sld [smem:[#allocation15_spill]] }
 0x4e4   : > { %p2500_p8 = scmp.ge.s32.totalorder %s28_s14, 6   ;;  %s2636_s26 = sld [smem:[#allocation24_spill]] }
 0x4e5   : > { %s2637_s20 = sld [smem:[#allocation16_spill]]  ;;  %s2638_s29 = sld [smem:[#allocation21_spill]] }
 0x4e6   : > { %s2639_s11 = sld [smem:[#allocation22_spill]]  ;;  %s2640_s10 = sld [smem:[#allocation17_spill]] }
 0x4e7   : > { %s2641_s15 = sld [smem:[#allocation18_spill]]  ;;  %s2642_s12 = sld [smem:[#allocation19_spill]] }
 0x4e8   : > { %s2643_s4 = sld [smem:[#allocation20_spill]]  ;;  %s2645_s24 = smov %s1831_s25 }
 0x4e9   : > { %s2646_s25 = smov %s2635_s27  ;;  %s2647_s27 = smov %s1843_s28 }
 0x4ea   : > { %s2649_s30 = smov %s1855_s8  ;;  %s2650_s8 = smov %s1859_s9 }
 0x4eb   : > { %s2648_s28 = smov %s2637_s20  ;;  %27 = sbr.rel (!%p2500_p8) target bundleno = 17 (0x11), region = 130 }
 0x4ec   : > { %s2651_s9 = smov %s2639_s11 }
 0x4ed   : > { %s2652_s11 = smov %s2641_s15 }
 0x4ee   : > { %s2653_s13 = smov %s2643_s4 }
 0x4f2   :  { %1085 = vsyncpa [#allocation3], 1 }
 0x4f3   :  { %1087 = vsyncpa [#allocation3 + $0x1], 1 }
 0x4f4   :  { %1088 = vsyncpa [#allocation6], 1 }
 0x4f5   :  { %1089 = vsyncpa [#allocation4], 1 }
 0x4f6   :  { %1091 = vsyncpa [#allocation4 + $0x1], 1 }
 0x4f7   :  { %1092 = vsyncpa [#allocation9], 1 }
 0x4f8   :  { %1094 = vsyncpa [#allocation9 + $0x1], 1 }

</bundles_post_ra>
